<compile_context>
chip_gen: v7x
topology: tpu7x:2x2x1
jax: 0.10.0
libtpu: 0.0.40
codegen_flags: <defaults>
</compile_context>

<pallas_src>
import functools

import jax
import jax.numpy as jnp
from jax import lax
from jax.experimental import pallas as pl
from jax.experimental.pallas import tpu as pltpu

EPS = 1e-5
LANES = 128


def _fold8(v):
    """(R,128) f32 -> (8,128) by summing groups of 8 sublanes (R % 8 == 0)."""
    r = v.shape[0]
    if r == 8:
        return v
    return jnp.sum(v.reshape(r // 8, 8, LANES), axis=0)


def _strip_partial(x_strip, t_strip):
    """Per-strip partials: (sum sq, sum t*sq) folded to (8,128)."""
    x = x_strip.astype(jnp.float32)
    t = t_strip.astype(jnp.float32)
    d = x - t
    sq = d * d          # (iput - target)**2
    tsq = t * sq        # target * loss_sum
    return _fold8(sq), _fold8(tsq)


def _myloss_kernel(x_ref, t_ref, s_ref, p_ref, *, rows, row_block, strip,
                   num_blocks):
    """One grid step = one (row_block,128) block -> (8,128) S/P partials."""
    n_strips = row_block // strip
    tail_rows = rows - (num_blocks - 1) * row_block   # valid rows, last block
    ragged = tail_rows != row_block                   # static (trace-time)

    def full_block():
        # Mask-free fast path: strip-mined loop, pure vld + VPU adds.
        def body(k, carry):
            s_acc, p_acc = carry
            off = pl.multiple_of(k * strip, strip)
            s_k, p_k = _strip_partial(x_ref[pl.ds(off, strip), :],
                                      t_ref[pl.ds(off, strip), :])
            return s_acc + s_k, p_acc + p_k

        init = (jnp.zeros((8, LANES), jnp.float32),
                jnp.zeros((8, LANES), jnp.float32))
        s, p = lax.fori_loop(0, n_strips, body, init, unroll=2)
        s_ref[...] = s
        p_ref[...] = p

    def last_block():
        # Cold path: only the single ragged last block ever runs this.
        # Everything here is static: full strips unmasked, at most one
        # partially valid strip with a compile-time-constant mask, strips
        # past the valid region skipped entirely.
        s = jnp.zeros((8, LANES), jnp.float32)
        p = jnp.zeros((8, LANES), jnp.float32)
        n_full = tail_rows // strip
        rem = tail_rows - n_full * strip
        if n_full:
            def body(k, carry):
                s_acc, p_acc = carry
                off = pl.multiple_of(k * strip, strip)
                s_k, p_k = _strip_partial(x_ref[pl.ds(off, strip), :],
                                          t_ref[pl.ds(off, strip), :])
                return s_acc + s_k, p_acc + p_k
            s, p = lax.fori_loop(0, n_full, body, (s, p), unroll=2)
        if rem:
            off = n_full * strip                      # static
            x = x_ref[pl.ds(off, strip), :].astype(jnp.float32)
            t = t_ref[pl.ds(off, strip), :].astype(jnp.float32)
            keep = lax.broadcasted_iota(jnp.int32, (strip, LANES), 0) < rem
            d = x - t
            sq = jnp.where(keep, d * d, 0.0)          # masked AFTER compute:
            tsq = jnp.where(keep, t * sq, 0.0)        # garbage rows -> 0.0
            s = s + _fold8(sq)
            p = p + _fold8(tsq)
        s_ref[...] = s
        p_ref[...] = p

    if not ragged:
        full_block()
    elif num_blocks == 1:
        last_block()
    else:
        blk = pl.program_id(0)
        pl.when(blk != num_blocks - 1)(full_block)
        pl.when(blk == num_blocks - 1)(last_block)


def myloss(iput, target, gamma, *, tile_rows=None):
    """Myloss forward pass with a Pallas TPU kernel.

    iput, target: same shape (any rank, any float dtype).
    gamma: python float / 0-d scalar.
    Returns a float32 scalar.
    """
    assert iput.shape == target.shape
    n = iput.size
    assert n > 0

    x = iput.reshape(-1)
    t = target.reshape(-1)

    itemsize = max(jnp.dtype(x.dtype).itemsize, jnp.dtype(t.dtype).itemsize)
    if tile_rows is None:
        # ~2 MiB per input block regardless of dtype (bf16 -> 8192 rows).
        tile_rows = (4096 * 4) // max(int(itemsize), 1)
    tile_rows = max(8, (tile_rows // 8) * 8)

    lane_aligned = (n % LANES == 0) and (n >= 8 * LANES)
    if not lane_aligned:
        # Rare fallback (lane-ragged or tiny inputs): zero-pad both flat
        # arrays to a multiple of 8*128.  Zero padding contributes exactly 0
        # to both weighted sums.  Lane-aligned inputs never take this copy.
        pad = (-n) % (8 * LANES)
        if pad:
            x = jnp.pad(x, (0, pad))
            t = jnp.pad(t, (0, pad))

    rows = x.size // LANES                    # >= 8
    x2 = x.reshape(rows, LANES)               # free (bitcast) reshape
    t2 = t.reshape(rows, LANES)

    row_block = min(tile_rows, (rows // 8) * 8)           # multiple of 8
    strip = 64 if row_block % 64 == 0 else 8               # strip | row_block
    num_blocks = (rows + row_block - 1) // row_block

    kernel = functools.partial(_myloss_kernel, rows=rows, row_block=row_block,
                               strip=strip, num_blocks=num_blocks)

    cost = pl.CostEstimate(
        flops=5 * rows * LANES,
        transcendentals=0,
        bytes_accessed=rows * LANES * (jnp.dtype(x2.dtype).itemsize
                                       + jnp.dtype(t2.dtype).itemsize)
        + 2 * num_blocks * 8 * LANES * 4,
    )

    s_part, p_part = pl.pallas_call(
        kernel,
        out_shape=(
            jax.ShapeDtypeStruct((num_blocks, 8, LANES), jnp.float32),
            jax.ShapeDtypeStruct((num_blocks, 8, LANES), jnp.float32),
        ),
        grid=(num_blocks,),
        in_specs=[
            pl.BlockSpec((row_block, LANES), lambda i: (i, 0)),
            pl.BlockSpec((row_block, LANES), lambda i: (i, 0)),
        ],
        out_specs=(
            pl.BlockSpec((None, 8, LANES), lambda i: (i, 0, 0)),
            pl.BlockSpec((None, 8, LANES), lambda i: (i, 0, 0)),
        ),
        compiler_params=pltpu.CompilerParams(
            dimension_semantics=("parallel",)),
        cost_estimate=cost,
    )(x2, t2)

    # Tiny final reduce + gamma combine in plain XLA:
    #   (1-g)*P + g*(S-P)  ==  g*S + (1-2g)*P
    g = jnp.asarray(gamma, jnp.float32)
    S = jnp.sum(s_part)
    P = jnp.sum(p_part)
    return g * S + (1.0 - 2.0 * g) * P + jnp.float32(EPS)


def myloss_ref(iput, target, gamma):
    x = iput.astype(jnp.float32)
    t = target.astype(jnp.float32)
    sq = (x - t) ** 2
    return ((1.0 - gamma) * jnp.sum(t * sq)
            + gamma * jnp.sum((1.0 - t) * sq)
            + EPS)


if __name__ == "__main__":
    key = jax.random.PRNGKey(0)
    ks = jax.random.split(key, 8)

    # --- Test 1: aligned NCHW case (zero-copy path, single block, no mask) ---
    B, C, H, W = 2, 4, 16, 16
    iput = jax.random.uniform(ks[0], (B, C, H, W), jnp.float32)
    target = (jax.random.uniform(ks[1], (B, C, H, W), jnp.float32) > 0.5
              ).astype(jnp.float32)
    gamma = 0.25
    out = jax.block_until_ready(myloss(iput, target, gamma))
    ref = myloss_ref(iput, target, gamma)
    assert jnp.allclose(out, ref, rtol=1e-5, atol=1e-4), (out, ref)

    # --- Test 2: lane-aligned but row-ragged (no pad copy; multi-block grid
    #     with the cold-path mask on the last block only) ---
    iput2 = jax.random.uniform(ks[2], (21, 128), jnp.float32)
    target2 = (jax.random.uniform(ks[3], (21, 128), jnp.float32) > 0.5
               ).astype(jnp.float32)
    out2 = jax.block_until_ready(myloss(iput2, target2, 0.6))
    ref2 = myloss_ref(iput2, target2, 0.6)
    assert jnp.allclose(out2, ref2, rtol=1e-5, atol=1e-4), (out2, ref2)

    # --- Test 3: lane-ragged tiny input (zero-pad fallback path) ---
    iput3 = jax.random.uniform(ks[4], (2, 3, 7, 5), jnp.float32)
    target3 = (jax.random.uniform(ks[5], (2, 3, 7, 5), jnp.float32) > 0.5
               ).astype(jnp.float32)
    out3 = jax.block_until_ready(myloss(iput3, target3, 0.1))
    ref3 = myloss_ref(iput3, target3, 0.1)
    assert jnp.allclose(out3, ref3, rtol=1e-5, atol=1e-4), (out3, ref3)

    # --- Test 4: native bf16 streaming (half HBM bytes, doubled row tile) ---
    iput4 = jax.random.uniform(ks[6], (B, C, H, W), jnp.float32
                               ).astype(jnp.bfloat16)
    target4 = (jax.random.uniform(ks[7], (B, C, H, W), jnp.float32) > 0.5
               ).astype(jnp.bfloat16)
    out4 = jax.block_until_ready(myloss(iput4, target4, 0.3))
    ref4 = myloss_ref(iput4, target4, 0.3)
    assert jnp.allclose(out4, ref4, rtol=1e-3, atol=1e-2), (out4, ref4)

    print("KERNEL_OK")
</pallas_src>

<mosaic_0001>
module attributes {stable_mosaic.version = 11 : i64} {
  func.func @_myloss_kernel(%arg0: i32, %arg1: memref<16x128xf32, #tpu.memory_space<vmem>>, %arg2: memref<16x128xf32, #tpu.memory_space<vmem>>, %arg3: memref<1x8x128xf32, #tpu.memory_space<vmem>>, %arg4: memref<1x8x128xf32, #tpu.memory_space<vmem>>) attributes {dimension_semantics = [#tpu.dimension_semantics<parallel>], iteration_bounds = array<i64: 1>, scalar_prefetch = 0 : i64, scratch_operands = 0 : i64, tpu.core_type = #tpu.core_type<tc>, window_params = [{transform_indices = @transform_0, window_bounds = array<i64: 16, 128>}, {transform_indices = @transform_1, window_bounds = array<i64: 16, 128>}, {transform_indices = @transform_2, window_bounds = array<i64: 1, 8, 128>}, {transform_indices = @transform_3, window_bounds = array<i64: 1, 8, 128>}]} {
    %cst = arith.constant 0.000000e+00 : f32
    %0 = vector.broadcast %cst : f32 to vector<8x128xf32>
    %cst_0 = arith.constant 0.000000e+00 : f32
    %1 = vector.broadcast %cst_0 : f32 to vector<8x128xf32>
    %c0_i32 = arith.constant 0 : i32
    %c8_i32 = arith.constant 8 : i32
    %2 = arith.muli %c0_i32, %c8_i32 : i32
    %3 = tpu.assume_multiple %2, 8 : i32
    %4 = arith.index_cast %3 : i32 to index
    %c0 = arith.constant 0 : index
    %5 = vector.load %arg1[%4, %c0] : memref<16x128xf32, #tpu.memory_space<vmem>>, vector<8x128xf32>
    %6 = arith.index_cast %3 : i32 to index
    %c0_1 = arith.constant 0 : index
    %7 = vector.load %arg2[%6, %c0_1] : memref<16x128xf32, #tpu.memory_space<vmem>>, vector<8x128xf32>
    %8 = arith.subf %5, %7 : vector<8x128xf32>
    %9 = arith.mulf %8, %8 : vector<8x128xf32>
    %10 = arith.mulf %7, %9 : vector<8x128xf32>
    %11 = arith.addf %0, %9 : vector<8x128xf32>
    %12 = arith.addf %1, %10 : vector<8x128xf32>
    %c1_i32 = arith.constant 1 : i32
    %c8_i32_2 = arith.constant 8 : i32
    %13 = arith.muli %c1_i32, %c8_i32_2 : i32
    %14 = tpu.assume_multiple %13, 8 : i32
    %15 = arith.index_cast %14 : i32 to index
    %c0_3 = arith.constant 0 : index
    %16 = vector.load %arg1[%15, %c0_3] : memref<16x128xf32, #tpu.memory_space<vmem>>, vector<8x128xf32>
    %17 = arith.index_cast %14 : i32 to index
    %c0_4 = arith.constant 0 : index
    %18 = vector.load %arg2[%17, %c0_4] : memref<16x128xf32, #tpu.memory_space<vmem>>, vector<8x128xf32>
    %19 = arith.subf %16, %18 : vector<8x128xf32>
    %20 = arith.mulf %19, %19 : vector<8x128xf32>
    %21 = arith.mulf %18, %20 : vector<8x128xf32>
    %22 = arith.addf %11, %20 : vector<8x128xf32>
    %23 = arith.addf %12, %21 : vector<8x128xf32>
    %c2_i32 = arith.constant 2 : i32
    %c0_5 = arith.constant 0 : index
    %c0_6 = arith.constant 0 : index
    %c0_7 = arith.constant 0 : index
    %24 = vector.load %arg3[%c0_5, %c0_6, %c0_7] : memref<1x8x128xf32, #tpu.memory_space<vmem>>, vector<1x8x128xf32>
    %25 = vector.shape_cast %24 : vector<1x8x128xf32> to vector<8x128xf32>
    %26 = vector.shape_cast %22 : vector<8x128xf32> to vector<1x8x128xf32>
    tpu.vector_store %arg3[%c0_5, %c0_6, %c0_7], %26 {strides = array<i32>} : memref<1x8x128xf32, #tpu.memory_space<vmem>>, vector<1x8x128xf32>,
    %c0_8 = arith.constant 0 : index
    %c0_9 = arith.constant 0 : index
    %c0_10 = arith.constant 0 : index
    %27 = vector.load %arg4[%c0_8, %c0_9, %c0_10] : memref<1x8x128xf32, #tpu.memory_space<vmem>>, vector<1x8x128xf32>
    %28 = vector.shape_cast %27 : vector<1x8x128xf32> to vector<8x128xf32>
    %29 = vector.shape_cast %23 : vector<8x128xf32> to vector<1x8x128xf32>
    tpu.vector_store %arg4[%c0_8, %c0_9, %c0_10], %29 {strides = array<i32>} : memref<1x8x128xf32, #tpu.memory_space<vmem>>, vector<1x8x128xf32>,
    return
  }
  func.func @transform_0(%arg0: i32) -> (i32, i32) {
    %c0_i32 = arith.constant 0 : i32
    %c0_i32_0 = arith.constant 0 : i32
    return %arg0, %c0_i32 : i32, i32
  }
  func.func @transform_1(%arg0: i32) -> (i32, i32) {
    %c0_i32 = arith.constant 0 : i32
    %c0_i32_0 = arith.constant 0 : i32
    return %arg0, %c0_i32 : i32, i32
  }
  func.func @transform_2(%arg0: i32) -> (i32, i32, i32) {
    %c0_i32 = arith.constant 0 : i32
    %c0_i32_0 = arith.constant 0 : i32
    %c0_i32_1 = arith.constant 0 : i32
    return %arg0, %c0_i32, %c0_i32_0 : i32, i32, i32
  }
  func.func @transform_3(%arg0: i32) -> (i32, i32, i32) {
    %c0_i32 = arith.constant 0 : i32
    %c0_i32_0 = arith.constant 0 : i32
    %c0_i32_1 = arith.constant 0 : i32
    return %arg0, %c0_i32, %c0_i32_0 : i32, i32, i32
  }
}

</mosaic_0001>

<bundles_post_ra>
// kernel: tpu_custom_call.1
= control target key start
LH: loop header
LB: loop body
LE: loop exit
PB: predicated region body
PF: predicated region fallthrough
CT: control target
= control target key end

     0   :  { %9 = vsyncpa [#allocation3], 0  ;;  %s267_s0 = inlined_call_operand.hbm [shape: f32[16,128], index: 0, kind: input, shape index: {}]   ;;  %s268_s1 = inlined_call_operand.hbm [shape: f32[16,128], index: 1, kind: input, shape index: {}]   ;;  %s269_s2 = inlined_call_operand.hbm [shape: f32[1,8,128], index: 2, kind: output, shape index: {0}]   ;;  %s270_s3 = inlined_call_operand.hbm [shape: f32[1,8,128], index: 3, kind: output, shape index: {1}]  }
   0x1   :  { %10 = vsyncpa [#allocation6], 0 }
   0x2   :  { %11 = vsyncpa [#allocation4], 0 }
   0x3   :  { %12 = vsyncpa [#allocation9], 0  ;;  %s193_s12 = smov [#allocation2]   ;;  %s97_s16 = scalar_lea.hbm %s267_s0, 256 }
   0x4   :  { %s18_s13 = sshll.u32 %s193_s12, 4  ;;  %p98_p0 = scmp.ne.s32.totalorder %s267_s0, %s97_s16  ;;  %s19_s13 = int_to_ptr.vmem [resolvable:$true] %s18_s13 }
   0x5   :  { %p101_p1 = scmp.lt.u32.totalorder %s97_s16, %s267_s0 }
   0x7   :  { %p103_p2 = pnand %p101_p1, %p98_p0 }
   0x9   :  { %106 = shalt.err (!%p103_p2)
}
   0xa   :  { %s107_s21 = scalar_lea.vmem %s19_s13, 256  ;;  %p112_p4 = scmp.lt.s32.totalorder %s19_s13, %s19_s13 }
   0xb   :  { %p108_p3 = scmp.ne.s32.totalorder %s19_s13, %s107_s21  ;;  %p113_p5 = scmp.lt.s32.totalorder %s107_s21, %s107_s21 }
   0xd   :  { %p114_p6 = por %p113_p5, %p112_p4 }
   0xf   :  { %p115_p7 = pnand %p114_p6, %p108_p3 }
  0x11   :  { %118 = shalt.err (!%p115_p7)
}
  0x12   :  { %s194_s22 = smov 128   ;;  %s195_s23 = smov 8  }
  0x13   :  { %24 = dma.hbm_to_vmem [thread:$0]  %s267_s0, 256, %s19_s13, [#allocation3], %s194_s22, %s194_s22, %s195_s23  }
  0x14   :  { %s196_s26 = smov [#allocation5]   ;;  %s119_s30 = scalar_lea.hbm %s268_s1, 256 }
  0x15   :  { %s30_s27 = sshll.u32 %s196_s26, 4  ;;  %p120_p8 = scmp.ne.s32.totalorder %s268_s1, %s119_s30  ;;  %s31_s27 = int_to_ptr.vmem [resolvable:$true] %s30_s27 }
  0x16   :  { %p123_p9 = scmp.lt.u32.totalorder %s119_s30, %s268_s1 }
  0x18   :  { %p125_p10 = pnand %p123_p9, %p120_p8 }
  0x1a   :  { %128 = shalt.err (!%p125_p10)
}
  0x1b   :  { %s129_s8 = scalar_lea.vmem %s31_s27, 256  ;;  %p134_p12 = scmp.lt.s32.totalorder %s31_s27, %s31_s27 }
  0x1c   :  { %p130_p11 = scmp.ne.s32.totalorder %s31_s27, %s129_s8  ;;  %p135_p13 = scmp.lt.s32.totalorder %s129_s8, %s129_s8 }
  0x1e   :  { %p136_p0 = por %p135_p13, %p134_p12 }
  0x20   :  { %p137_p1 = pnand %p136_p0, %p130_p11 }
  0x22   :  { %140 = shalt.err (!%p137_p1)
}
  0x23   :  { %36 = dma.hbm_to_vmem [thread:$0]  %s268_s1, 256, %s31_s27, [#allocation6], %s194_s22, %s194_s22, %s195_s23  }
  0x24   :  { %185 = dma.done.wait [#allocation3], 256  }
  0x25   :  { %186 = vsyncadd [#allocation3], 4294967040 }
  0x26   :  { %187 = dma.done.wait [#allocation6], 256  }
  0x27   :  { %188 = vsyncadd [#allocation6], 4294967040  ;;  %v43_v0 = vld [vmem:[#allocation2] sm:$0xff]  ;;  %v44_v1 = vld [vmem:[#allocation5] sm:$0xff]  ;;  %s197_s10 = smov [#allocation7]   ;;  %s198_s12 = smov [#allocation8]  }
  0x28   :  { %v51_v2 = vld [vmem:[#allocation2 + $0x8] sm:$0xff]  ;;  %v45_v3 = vsub.f32 %v43_v0, %v44_v1  ;;  %v53_v4 = vld [vmem:[#allocation5 + $0x8] sm:$0xff]  ;;  %s67_s11 = sshll.u32 %s197_s10, 4  ;;  %s77_s13 = sshll.u32 %s198_s12, 4  ;;  %s68_s11 = int_to_ptr.vmem [resolvable:$true] %s67_s11  ;;  %s78_s13 = int_to_ptr.vmem [resolvable:$true] %s77_s13 }
  0x29   :  { %v54_v5 = vsub.f32 %v51_v2, %v53_v4  ;;  %s141_s1 = scalar_lea.vmem %s68_s11, 128  ;;  %p146_p3 = scmp.lt.s32.totalorder %s68_s11, %s68_s11 }
  0x2a   :  { %v46_v6 = vmul.f32 %v45_v3, %v45_v3  ;;  %p142_p2 = scmp.ne.s32.totalorder %s68_s11, %s141_s1  ;;  %p147_p4 = scmp.lt.s32.totalorder %s141_s1, %s141_s1 }
  0x2b   :  { %v55_v7 = vmul.f32 %v54_v5, %v54_v5 }
  0x2c   :  { %v47_v8 = vmul.f32 %v46_v6, %v44_v1  ;;  %p148_p5 = por %p147_p4, %p146_p3 }
  0x2d   :  { %v57_v9 = vadd.f32 %v55_v7, %v46_v6  ;;  %v56_v10 = vmul.f32 %v55_v7, %v53_v4 }
  0x2e   :  { %p149_p6 = pnand %p148_p5, %p142_p2 }
  0x2f   :  { %59 = vst [vmem:[#allocation7] sm:$0xff] %v57_v9  ;;  %v58_v11 = vadd.f32 %v56_v10, %v47_v8 }
  0x30   :  { %152 = shalt.err (!%p149_p6)
}
  0x31   :  { %s153_s16 = scalar_lea.hbm %s269_s2, 128 }
  0x32   :  { %p154_p7 = scmp.ne.s32.totalorder %s269_s2, %s153_s16  ;;  %p157_p8 = scmp.lt.u32.totalorder %s153_s16, %s269_s2 }
  0x34   :  { %p159_p9 = pnand %p157_p8, %p154_p7 }
  0x36   :  { %162 = shalt.err (!%p159_p9)
}
  0x37   :  { %70 = dma.vmem_to_hbm [thread:$0]  %s68_s11, 128, %s269_s2, [#allocation4]   ;;  %60 = vst [vmem:[#allocation8] sm:$0xff] %v58_v11 }
  0x38   :  { %s163_s23 = scalar_lea.vmem %s78_s13, 128  ;;  %p168_p11 = scmp.lt.s32.totalorder %s78_s13, %s78_s13 }
  0x39   :  { %p164_p10 = scmp.ne.s32.totalorder %s78_s13, %s163_s23  ;;  %p169_p12 = scmp.lt.s32.totalorder %s163_s23, %s163_s23 }
  0x3b   :  { %p170_p13 = por %p169_p12, %p168_p11 }
  0x3d   :  { %p171_p0 = pnand %p170_p13, %p164_p10 }
  0x3f   :  { %174 = shalt.err (!%p171_p0)
}
  0x40   :  { %s175_s26 = scalar_lea.hbm %s270_s3, 128 }
  0x41   :  { %p176_p1 = scmp.ne.s32.totalorder %s270_s3, %s175_s26  ;;  %p179_p2 = scmp.lt.u32.totalorder %s175_s26, %s270_s3 }
  0x43   :  { %p181_p3 = pnand %p179_p2, %p176_p1 }
  0x45   :  { %184 = shalt.err (!%p181_p3)
}
  0x46   :  { %80 = dma.vmem_to_hbm [thread:$0]  %s78_s13, 128, %s270_s3, [#allocation9]  }
  0x47   :  { %189 = dma.done.wait [#allocation4], 128  }
  0x48   :  { %190 = vsyncadd [#allocation4], 4294967168 }
  0x49   :  { %191 = dma.done.wait [#allocation9], 128  }
  0x4a   :  { %192 = vsyncadd [#allocation9], 4294967168 }
  0x4b   :  { %87 = vsyncpa [#allocation3], 1 }
  0x4c   :  { %88 = vsyncpa [#allocation6], 1 }
  0x4d   :  { %89 = vsyncpa [#allocation4], 1 }
  0x4e   :  { %90 = vsyncpa [#allocation9], 1 }

</bundles_post_ra>
